<compile_context>
chip_gen: v7x
topology: tpu7x:2x2x1
jax: 0.10.0
libtpu: 0.0.40
codegen_flags: <defaults>
</compile_context>

<pallas_src>
import jax
import jax.numpy as jnp
from jax.experimental import pallas as pl
from jax.experimental.pallas import tpu as pltpu


def _mlp_kernel(x_ref, w1b1_ref, w2b2_ref, o_ref):
    # x_ref:    [TB, D_in]          (rows of states)
    # w1b1_ref: [D_in + 1, H]       (rows 0..D_in-1 = W1, row D_in = b1)
    # w2b2_ref: [H + 1, 128]        (rows 0..H-1 = W2 padded to 128 cols, row H = b2)
    # o_ref:    [TB, 128]           (lane-dense; real actions live in cols [:A])
    x = x_ref[...]
    d_in = x_ref.shape[1]
    hdim = w1b1_ref.shape[1]

    # fc1 as D_in rank-1 broadcast-FMAs on the VPU (K=4 is too shallow for the MXU),
    # with the bias folded into the first term.  Static Python unroll.
    b1 = w1b1_ref[pl.ds(d_in, 1), :]                       # [1, H]
    h = x[:, 0:1] * w1b1_ref[pl.ds(0, 1), :] + b1          # [TB, H]
    for k in range(1, d_in):
        h = h + x[:, k:k + 1] * w1b1_ref[pl.ds(k, 1), :]
    h = jnp.maximum(h, jnp.float32(0.0))                   # ReLU (VPU)

    # fc2 on the MXU with a 128-wide (lane-dense) output tile.
    w2 = w2b2_ref[pl.ds(0, hdim), :]                       # [H, 128]
    b2 = w2b2_ref[pl.ds(hdim, 1), :]                       # [1, 128]
    out = jnp.dot(h, w2, preferred_element_type=jnp.float32) + b2
    o_ref[...] = out.astype(o_ref.dtype)


def linear_deep_q_forward(state, w1, b1, w2, b2):
    """relu(state @ W1 + b1) @ W2 + b2.

    state: [B, D_in] f32
    w1:    [D_in, H] f32   (transpose of torch fc1.weight)
    b1:    [1, H]    f32
    w2:    [H, A]    f32   (transpose of torch fc2.weight)
    b2:    [1, A]    f32
    returns [B, A] f32
    """
    B, d_in = state.shape
    hdim = w1.shape[1]
    n_actions = w2.shape[1]
    LANES = 128

    # --- pack params: 5 tiny inputs -> 2 (plus x) -----------------------------
    w1b1 = jnp.concatenate([w1, b1.reshape(1, hdim)], axis=0)          # [D_in+1, H]
    a_pad = max(LANES, ((n_actions + LANES - 1) // LANES) * LANES)     # lane-dense cols
    w2p = jnp.zeros((hdim, a_pad), jnp.float32).at[:, :n_actions].set(w2)
    b2p = jnp.zeros((1, a_pad), jnp.float32).at[:, :n_actions].set(b2.reshape(1, -1))
    w2b2 = jnp.concatenate([w2p, b2p], axis=0)                         # [H+1, a_pad]

    # --- batch tiling: one big tile per grid step, parallel across TCs --------
    tb = 512 if B >= 512 else max(8, ((B + 7) // 8) * 8)
    b_pad = ((B + tb - 1) // tb) * tb
    x = state
    if b_pad != B:
        x = jnp.zeros((b_pad, d_in), state.dtype).at[:B, :].set(state)

    out = pl.pallas_call(
        _mlp_kernel,
        out_shape=jax.ShapeDtypeStruct((b_pad, a_pad), jnp.float32),
        grid=(b_pad // tb,),
        in_specs=[
            pl.BlockSpec((tb, d_in), lambda i: (i, 0)),
            pl.BlockSpec(w1b1.shape, lambda i: (0, 0)),
            pl.BlockSpec(w2b2.shape, lambda i: (0, 0)),
        ],
        out_specs=pl.BlockSpec((tb, a_pad), lambda i: (i, 0)),
        compiler_params=pltpu.CompilerParams(
            dimension_semantics=("parallel",)),
        cost_estimate=pl.CostEstimate(
            flops=2 * b_pad * (d_in * hdim + hdim * a_pad),
            transcendentals=0,
            bytes_accessed=4 * (b_pad * d_in + w1b1.size + w2b2.size
                                + b_pad * a_pad)),
    )(x, w1b1, w2b2)

    # Slice the padded rows/cols back to the real problem size.
    return out[:B, :n_actions]


if __name__ == "__main__":
    # CartPole-like dims: input_dims = (4,), n_actions = 2, hidden = 128.
    batch = 8
    input_dims = 4
    hidden = 128
    n_actions = 2

    key = jax.random.PRNGKey(0)
    k_x, k_w1, k_b1, k_w2, k_b2 = jax.random.split(key, 5)

    # Deterministic init matching torch.nn.Linear's default (uniform +-1/sqrt(fan_in)).
    bound1 = 1.0 / (input_dims ** 0.5)
    bound2 = 1.0 / (hidden ** 0.5)
    w1 = jax.random.uniform(k_w1, (input_dims, hidden), jnp.float32, -bound1, bound1)
    b1 = jax.random.uniform(k_b1, (1, hidden), jnp.float32, -bound1, bound1)
    w2 = jax.random.uniform(k_w2, (hidden, n_actions), jnp.float32, -bound2, bound2)
    b2 = jax.random.uniform(k_b2, (1, n_actions), jnp.float32, -bound2, bound2)

    state = jax.random.normal(k_x, (batch, input_dims), jnp.float32)

    actions = linear_deep_q_forward(state, w1, b1, w2, b2)
    actions = jax.block_until_ready(actions)

    # Reference check in plain JAX.
    ref = jnp.maximum(state @ w1 + b1, 0.0) @ w2 + b2
    assert actions.shape == (batch, n_actions)
    assert jnp.allclose(actions, ref, atol=1e-5, rtol=1e-5)

    print("KERNEL_OK")
</pallas_src>

<mosaic_0001>
module attributes {stable_mosaic.version = 11 : i64} {
  func.func @_mlp_kernel(%arg0: i32, %arg1: memref<8x4xf32, #tpu.memory_space<vmem>>, %arg2: memref<5x128xf32, #tpu.memory_space<vmem>>, %arg3: memref<129x128xf32, #tpu.memory_space<vmem>>, %arg4: memref<8x128xf32, #tpu.memory_space<vmem>>) attributes {dimension_semantics = [#tpu.dimension_semantics<parallel>], iteration_bounds = array<i64: 1>, scalar_prefetch = 0 : i64, scratch_operands = 0 : i64, tpu.core_type = #tpu.core_type<tc>, window_params = [{transform_indices = @transform_0, window_bounds = array<i64: 8, 4>}, {pipeline_mode = #tpu.pipeline_mode<synchronous>, transform_indices = @transform_1, window_bounds = array<i64: 5, 128>}, {pipeline_mode = #tpu.pipeline_mode<synchronous>, transform_indices = @transform_2, window_bounds = array<i64: 129, 128>}, {transform_indices = @transform_3, window_bounds = array<i64: 8, 128>}]} {
    %c0 = arith.constant 0 : index
    %c0_0 = arith.constant 0 : index
    %0 = vector.load %arg1[%c0, %c0_0] : memref<8x4xf32, #tpu.memory_space<vmem>>, vector<8x4xf32>
    %c4 = arith.constant 4 : index
    %c0_1 = arith.constant 0 : index
    %1 = vector.load %arg2[%c4, %c0_1] : memref<5x128xf32, #tpu.memory_space<vmem>>, vector<1x128xf32>
    %2 = vector.extract_strided_slice %0 {offsets = [0, 0], sizes = [8, 1], strides = [1, 1]} : vector<8x4xf32> to vector<8x1xf32>
    %c0_2 = arith.constant 0 : index
    %c0_3 = arith.constant 0 : index
    %3 = vector.load %arg2[%c0_2, %c0_3] : memref<5x128xf32, #tpu.memory_space<vmem>>, vector<1x128xf32>
    %4 = vector.broadcast %2 : vector<8x1xf32> to vector<8x128xf32>
    %5 = vector.broadcast %3 : vector<1x128xf32> to vector<8x128xf32>
    %6 = arith.mulf %4, %5 : vector<8x128xf32>
    %7 = vector.broadcast %1 : vector<1x128xf32> to vector<8x128xf32>
    %8 = arith.addf %6, %7 : vector<8x128xf32>
    %9 = vector.extract_strided_slice %0 {offsets = [0, 1], sizes = [8, 1], strides = [1, 1]} : vector<8x4xf32> to vector<8x1xf32>
    %c1 = arith.constant 1 : index
    %c0_4 = arith.constant 0 : index
    %10 = vector.load %arg2[%c1, %c0_4] : memref<5x128xf32, #tpu.memory_space<vmem>>, vector<1x128xf32>
    %11 = vector.broadcast %9 : vector<8x1xf32> to vector<8x128xf32>
    %12 = vector.broadcast %10 : vector<1x128xf32> to vector<8x128xf32>
    %13 = arith.mulf %11, %12 : vector<8x128xf32>
    %14 = arith.addf %8, %13 : vector<8x128xf32>
    %15 = vector.extract_strided_slice %0 {offsets = [0, 2], sizes = [8, 1], strides = [1, 1]} : vector<8x4xf32> to vector<8x1xf32>
    %c2 = arith.constant 2 : index
    %c0_5 = arith.constant 0 : index
    %16 = vector.load %arg2[%c2, %c0_5] : memref<5x128xf32, #tpu.memory_space<vmem>>, vector<1x128xf32>
    %17 = vector.broadcast %15 : vector<8x1xf32> to vector<8x128xf32>
    %18 = vector.broadcast %16 : vector<1x128xf32> to vector<8x128xf32>
    %19 = arith.mulf %17, %18 : vector<8x128xf32>
    %20 = arith.addf %14, %19 : vector<8x128xf32>
    %21 = vector.extract_strided_slice %0 {offsets = [0, 3], sizes = [8, 1], strides = [1, 1]} : vector<8x4xf32> to vector<8x1xf32>
    %c3 = arith.constant 3 : index
    %c0_6 = arith.constant 0 : index
    %22 = vector.load %arg2[%c3, %c0_6] : memref<5x128xf32, #tpu.memory_space<vmem>>, vector<1x128xf32>
    %23 = vector.broadcast %21 : vector<8x1xf32> to vector<8x128xf32>
    %24 = vector.broadcast %22 : vector<1x128xf32> to vector<8x128xf32>
    %25 = arith.mulf %23, %24 : vector<8x128xf32>
    %26 = arith.addf %20, %25 : vector<8x128xf32>
    %cst = arith.constant 0.000000e+00 : f32
    %27 = vector.broadcast %cst : f32 to vector<8x128xf32>
    %28 = arith.maximumf %26, %27 : vector<8x128xf32>
    %c0_7 = arith.constant 0 : index
    %c0_8 = arith.constant 0 : index
    %29 = vector.load %arg3[%c0_7, %c0_8] : memref<129x128xf32, #tpu.memory_space<vmem>>, vector<128x128xf32>
    %c128 = arith.constant 128 : index
    %c0_9 = arith.constant 0 : index
    %30 = vector.load %arg3[%c128, %c0_9] : memref<129x128xf32, #tpu.memory_space<vmem>>, vector<1x128xf32>
    %cst_10 = arith.constant dense<0.000000e+00> : vector<8x128xf32>
    %31 = tpu.matmul %28, %29, %cst_10 {dimension_numbers = #tpu.dot_dimension_numbers<[1], [0], [0], [1], [0, 0, 1, 1], [], []>} : vector<8x128xf32>, vector<128x128xf32>, vector<8x128xf32> -> vector<8x128xf32>
    %32 = vector.broadcast %30 : vector<1x128xf32> to vector<8x128xf32>
    %33 = arith.addf %31, %32 : vector<8x128xf32>
    %c0_11 = arith.constant 0 : index
    %c0_12 = arith.constant 0 : index
    %34 = vector.load %arg4[%c0_11, %c0_12] : memref<8x128xf32, #tpu.memory_space<vmem>>, vector<8x128xf32>
    tpu.vector_store %arg4[%c0_11, %c0_12], %33 {strides = array<i32>} : memref<8x128xf32, #tpu.memory_space<vmem>>, vector<8x128xf32>,
    return
  }
  func.func @transform_0(%arg0: i32) -> (i32, i32) {
    %c0_i32 = arith.constant 0 : i32
    %c0_i32_0 = arith.constant 0 : i32
    return %arg0, %c0_i32 : i32, i32
  }
  func.func @transform_1(%arg0: i32) -> (i32, i32) {
    %c0_i32 = arith.constant 0 : i32
    %c0_i32_0 = arith.constant 0 : i32
    %c0_i32_1 = arith.constant 0 : i32
    return %c0_i32, %c0_i32_0 : i32, i32
  }
  func.func @transform_2(%arg0: i32) -> (i32, i32) {
    %c0_i32 = arith.constant 0 : i32
    %c0_i32_0 = arith.constant 0 : i32
    %c0_i32_1 = arith.constant 0 : i32
    return %c0_i32, %c0_i32_0 : i32, i32
  }
  func.func @transform_3(%arg0: i32) -> (i32, i32) {
    %c0_i32 = arith.constant 0 : i32
    %c0_i32_0 = arith.constant 0 : i32
    return %arg0, %c0_i32 : i32, i32
  }
}

</mosaic_0001>

<bundles_post_ra>
// kernel: tpu_custom_call.1
= control target key start
LH: loop header
LB: loop body
LE: loop exit
PB: predicated region body
PF: predicated region fallthrough
CT: control target
= control target key end

     0   :  { %8 = vsyncpa [#allocation3], 0  ;;  %s407_s0 = inlined_call_operand.vmem [shape: f32[8,4], index: 0, kind: input, shape index: {}]   ;;  %s408_s1 = inlined_call_operand.vmem [shape: f32[5,128], index: 1, kind: input, shape index: {}]   ;;  %s409_s2 = inlined_call_operand.hbm [shape: f32[129,128], index: 2, kind: input, shape index: {}]   ;;  %s410_s3 = inlined_call_operand.hbm [shape: f32[8,128], index: 3, kind: output, shape index: {}]  }
   0x1   :  { %9 = vsyncpa [#allocation4], 0  ;;  %s334_s12 = smov [#allocation2]   ;;  %s286_s16 = scalar_lea.hbm %s409_s2, 2176 }
   0x2   :  { %s19_s13 = sshll.u32 %s334_s12, 4  ;;  %p287_p0 = scmp.ne.s32.totalorder %s409_s2, %s286_s16  ;;  %s20_s13 = int_to_ptr.vmem [resolvable:$true] %s19_s13 }
   0x3   :  { %p290_p1 = scmp.lt.u32.totalorder %s286_s16, %s409_s2 }
   0x5   :  { %p292_p2 = pnand %p290_p1, %p287_p0 }
   0x7   :  { %295 = shalt.err (!%p292_p2)
}
   0x8   :  { %s296_s21 = scalar_lea.vmem %s20_s13, 2176  ;;  %p301_p4 = scmp.lt.s32.totalorder %s20_s13, %s20_s13 }
   0x9   :  { %p297_p3 = scmp.ne.s32.totalorder %s20_s13, %s296_s21  ;;  %p302_p5 = scmp.lt.s32.totalorder %s296_s21, %s296_s21 }
   0xb   :  { %p303_p6 = por %p302_p5, %p301_p4 }
   0xd   :  { %p304_p7 = pnand %p303_p6, %p297_p3 }
   0xf   :  { %307 = shalt.err (!%p304_p7)
}
  0x10   :  { %s335_s22 = smov 128   ;;  %s336_s23 = smov 8  }
  0x11   :  { %25 = dma.hbm_to_vmem [thread:$0]  %s409_s2, 2176, %s20_s13, [#allocation3], %s335_s22, %s335_s22, %s336_s23  }
  0x12   :  { %330 = dma.done.wait [#allocation3], 2176  }
  0x13   :  { %331 = vsyncadd [#allocation3], 4294965120  ;;  %v337_v0 = vmov 0   ;;  %v338_v1 = vmov 2   ;;  %v339_v2 = vmov 0.0|0.0   ;;  %v29_v3 = vld [vmem:[%s407_s0] sm:$0xff] }
  0x14   :  { %281 = vset.pattern.permute.xlu0 %v337_v0  ;;  %283 = vset.pattern.permute.xlu1 %v338_v1  ;;  %v81_v4 = vld [vmem:[#allocation2] sm:$0xff]  ;;  %v82_v5 = vld [vmem:[#allocation2 + $0x8] sm:$0xff]  ;;  %v83_v7 = vld [vmem:[#allocation2 + $0x10] sm:$0xff]  ;;  %v340_v12 = vmov 1   ;;  %v341_v13 = vmov 3   ;;  %vm342_vm0 = vmmov 0  }
  0x15   :  { %246 = vmatprep.subr.bf16.mxu0 %v339_v2  ;;  %34 = vperm.xlu0 %281, %v29_v3   ;;  %v247_v6 = vpack.c.bf16 %v82_v5, %v81_v4  ;;  %v84_v8 = vld [vmem:[#allocation2 + $0x18] sm:$0xff]  ;;  %v85_v10 = vld [vmem:[#allocation2 + $0x20] sm:$0xff]  ;;  %v86_v11 = vld [vmem:[#allocation2 + $0x28] sm:$0xff]  ;;  %v343_v21 = vmov 0.0   ;;  %s344_s9 = smov [#allocation5]  }
  0x16   :  { %60 = vperm.xlu1 %283, %v29_v3   ;;  %v250_v9 = vpack.c.bf16 %v84_v8, %v83_v7  ;;  %v253_v14 = vpack.c.bf16 %v86_v11, %v85_v10  ;;  %v87_v15 = vld [vmem:[#allocation2 + $0x30] sm:$0xff]  ;;  %v88_v16 = vld [vmem:[#allocation2 + $0x38] sm:$0xff]  ;;  %v89_v18 = vld [vmem:[#allocation2 + $0x40] sm:$0xff]  ;;  %243 = vmatprep.mubr.msk.f32.mxu0 %vm342_vm0, %v343_v21  ;;  %s179_s10 = sshll.u32 %s344_s9, 4  ;;  %s180_s10 = int_to_ptr.vmem [resolvable:$true] %s179_s10 }
  0x17   :  { %248 = vmatpush3.bf16.msra.mxu0 %v247_v6  ;;  %v256_v17 = vpack.c.bf16 %v88_v16, %v87_v15  ;;  %v90_v19 = vld [vmem:[#allocation2 + $0x48] sm:$0xff]  ;;  %v91_v22 = vld [vmem:[#allocation2 + $0x50] sm:$0xff]  ;;  %v92_v23 = vld [vmem:[#allocation2 + $0x58] sm:$0xff]  ;;  %s308_s11 = scalar_lea.vmem %s180_s10, 128  ;;  %p313_p9 = scmp.lt.s32.totalorder %s180_s10, %s180_s10 }
  0x18   :  { %249 = vmatprep.subr.bf16.mxu0 %v339_v2  ;;  %v259_v20 = vpack.c.bf16 %v90_v19, %v89_v18  ;;  %v262_v24 = vpack.c.bf16 %v92_v23, %v91_v22  ;;  %v93_v25 = vld [vmem:[#allocation2 + $0x60] sm:$0xff]  ;;  %v94_v26 = vld [vmem:[#allocation2 + $0x68] sm:$0xff]  ;;  %v95_v28 = vld [vmem:[#allocation2 + $0x70] sm:$0xff]  ;;  %p309_p8 = scmp.ne.s32.totalorder %s180_s10, %s308_s11  ;;  %p314_p10 = scmp.lt.s32.totalorder %s308_s11, %s308_s11 }
  0x19   :  { %282 = vset.pattern.permute.xlu0 %v340_v12  ;;  %v265_v27 = vpack.c.bf16 %v94_v26, %v93_v25  ;;  %v96_v29 = vld [vmem:[#allocation2 + $0x78] sm:$0xff]  ;;  %v188_v31 = vld [vmem:[%s408_s1] ss:$0 sm:$0xff]  ;;  %v189_v35 = vld [vmem:[%s408_s1 + $0x4] ss:$0 sm:$0xff] }
  0x1a   :  { %284 = vset.pattern.permute.xlu1 %v341_v13  ;;  %49 = vperm.xlu0 %282, %v29_v3   ;;  %v268_v30 = vpack.c.bf16 %v96_v29, %v95_v28  ;;  %v190_v36 = vld [vmem:[%s408_s1 + $0x1] ss:$0 sm:$0xff]  ;;  %v191_v37 = vld [vmem:[%s408_s1 + $0x2] ss:$0 sm:$0xff]  ;;  %v192_v39 = vld [vmem:[%s408_s1 + $0x3] ss:$0 sm:$0xff]  ;;  %p315_p11 = por %p314_p10, %p313_p9 }
  0x1b   :  { %71 = vperm.xlu1 %284, %v29_v3   ;;  %251 = vmatpush3.bf16.msra.mxu0 %v250_v9  ;;  %v193_v49 = vld [vmem:[#allocation2 + $0x80] ss:$0 sm:$0xff] }
  0x1c   :  { %252 = vmatprep.subr.bf16.mxu0 %v339_v2  ;;  %p316_p12 = pnand %p315_p11, %p309_p8 }
  0x1e   :  { %285 = vset.pattern.permute.xlu0 %v341_v13 }
  0x1f   :  { %254 = vmatpush3.bf16.msra.mxu0 %v253_v14 }
  0x20   :  { %255 = vmatprep.subr.bf16.mxu0 %v339_v2 }
  0x23   :  { %257 = vmatpush3.bf16.msra.mxu0 %v256_v17 }
  0x24   :  { %258 = vmatprep.subr.bf16.mxu0 %v339_v2 }
  0x27   :  { %260 = vmatpush3.bf16.msra.mxu0 %v259_v20 }
  0x28   :  { %261 = vmatprep.subr.bf16.mxu0 %v339_v2 }
  0x2b   :  { %263 = vmatpush3.bf16.msra.mxu0 %v262_v24 }
  0x2c   :  { %264 = vmatprep.subr.bf16.mxu0 %v339_v2 }
  0x2f   :  { %266 = vmatpush3.bf16.msra.mxu0 %v265_v27 }
  0x30   :  { %267 = vmatprep.subr.bf16.mxu0 %v339_v2 }
  0x33   :  { %269 = vmatpush3.bf16.msra.mxu0 %v268_v30 }
  0x94   :  { %v35_v32 = vpop.permute.xlu0 %34 }
  0x95   :  { %v61_v33 = vpop.permute.xlu1 %60  ;;  %v41_v34 = vmul.f32 %v188_v31, %v35_v32 }
  0x96   :  { %v67_v43 = vmul.f32 %v191_v37, %v61_v33 }
  0x97   :  { %v46_v41 = vadd.f32 %v189_v35, %v41_v34 }
  0x99   :  { %v50_v38 = vpop.permute.xlu0 %49 }
  0x9a   :  { %v72_v40 = vpop.permute.xlu1 %71  ;;  %v56_v42 = vmul.f32 %v190_v36, %v50_v38 }
  0x9b   :  { %v78_v45 = vmul.f32 %v192_v39, %v72_v40 }
  0x9c   :  { %v57_v44 = vadd.f32 %v56_v42, %v46_v41 }
  0x9e   :  { %v68_v46 = vadd.f32 %v67_v43, %v57_v44 }
  0xa0   :  { %v79_v47 = vadd.f32 %v78_v45, %v68_v46 }
  0xa2   :  { %v80_v48 = vmax.f32 %v79_v47, 0.0 }
  0xa4   :  { %244 = vmatmul.mubr.f32.vlgmr.msra.gmra.mrb[0].mxu0 %v80_v48 }
 0x177   :  { %v168_v50 = vpop.f32.mrb[0].mxu0 }
 0x178   :  { %v169_v51 = vadd.f32 %v193_v49, %v168_v50  ;;  %v245_v52 = vpop.f32.mrb[1].mxu0 }
 0x17a   :  { %172 = vst [vmem:[#allocation5] sm:$0xff] %v169_v51 }
 0x17b   :  { %319 = shalt.err (!%p316_p12)
}
 0x17c   :  { %s320_s13 = scalar_lea.hbm %s410_s3, 128 }
 0x17d   :  { %p321_p13 = scmp.ne.s32.totalorder %s410_s3, %s320_s13  ;;  %p324_p0 = scmp.lt.u32.totalorder %s320_s13, %s410_s3 }
 0x17f   :  { %p326_p1 = pnand %p324_p0, %p321_p13 }
 0x181   :  { %329 = shalt.err (!%p326_p1)
}
 0x182   :  { %182 = dma.vmem_to_hbm [thread:$0]  %s180_s10, 128, %s410_s3, [#allocation4]  }
 0x183   :  { %332 = dma.done.wait [#allocation4], 128  }
 0x184   :  { %333 = vsyncadd [#allocation4], 4294967168 }
 0x185   :  { %186 = vsyncpa [#allocation3], 1 }
 0x186   :  { %187 = vsyncpa [#allocation4], 1 }

</bundles_post_ra>
